<compile_context>
chip_gen: v7x
topology: tpu7x:2x2x1
jax: 0.10.0
libtpu: 0.0.40
codegen_flags: <defaults>
</compile_context>

<pallas_src>
import functools

import jax
import jax.numpy as jnp
from jax import lax
from jax.experimental import pallas as pl
from jax.experimental.pallas import tpu as pltpu

LN_EPS = 1e-5
HEAD_PAD = 128  # lane-dense width for the packed heads / output slab


# ----------------------------------------------------------------------------
# small helpers
# ----------------------------------------------------------------------------
def _cdiv(a, b):
    return (a + b - 1) // b


def _round_up(x, m):
    return ((x + m - 1) // m) * m


def _num_tensorcores():
    """Best-effort TensorCore count (2 on v7x megacore, 1 on v5e/v6e)."""
    try:
        return max(1, int(getattr(jax.devices()[0], "num_cores", 1)))
    except Exception:  # pragma: no cover - defensive
        return 1


def _choose_tiling(batch, block_b, min_tiles):
    """Pick (num_tiles, tile_rows, padded_batch) from the tile count first."""
    n = _cdiv(batch, block_b)
    if min_tiles is not None and min_tiles > 1:
        # Only split further if the batch actually fills >= min_tiles full
        # 16-row sublane groups (avoid creating all-padding tiles).
        n = max(n, min(min_tiles, _cdiv(batch, 16)))
    tb = _round_up(_cdiv(batch, n), 16)
    b_pad = n * tb
    return n, tb, b_pad


def _const_spec(shape):
    """Full-array block, constant index_map -> stays VMEM-resident.

    Single-buffered when the running JAX supports pl.Buffered (the block never
    changes, so double-buffering it is wasted VMEM + swap bookkeeping)."""
    idx = lambda i: (0, 0)
    if hasattr(pl, "Buffered"):
        try:
            return pl.BlockSpec(shape, idx, pipeline_mode=pl.Buffered(1))
        except TypeError:
            pass
    return pl.BlockSpec(shape, idx)


# ----------------------------------------------------------------------------
# kernel
# ----------------------------------------------------------------------------
def _layernorm(h, gamma, beta):
    """Two-pass LayerNorm (mean, then centered variance).

    Safer than E[x^2]-E[x]^2 when post-matmul activations develop a large mean
    relative to their std (e.g. after training updates)."""
    mu = jnp.mean(h, axis=-1, keepdims=True)
    d = h - mu
    var = jnp.mean(d * d, axis=-1, keepdims=True)
    return d * lax.rsqrt(var + LN_EPS) * gamma + beta


def dqn_kernel(
    x_ref,
    w1_ref, b1_ref, g1_ref, be1_ref,
    w2_ref, b2_ref, g2_ref, be2_ref,
    wh1_ref, bh1_ref,          # fused value||advantage head-1  (256 -> 128)
    wq2_ref, bq2_ref,          # fused + dueling-folded head-2  (128 -> 128)
    out_ref,
):
    # x may already be bf16 at the kernel boundary; astype is a no-op then.
    x = x_ref[...].astype(jnp.bfloat16)

    # ---- feature trunk: bf16 matmul operands, f32 accumulation / LN stats.
    # LN-normalize + ReLU + bf16 cast fused -> the (tb,256) intermediate is
    # materialized once, in bf16 (halves activation vst/vld bytes).
    h = jnp.dot(x, w1_ref[...], preferred_element_type=jnp.float32) + b1_ref[...]
    h = jnp.maximum(_layernorm(h, g1_ref[...], be1_ref[...]), 0.0).astype(jnp.bfloat16)

    h = jnp.dot(h, w2_ref[...], preferred_element_type=jnp.float32) + b2_ref[...]
    h = jnp.maximum(_layernorm(h, g2_ref[...], be2_ref[...]), 0.0).astype(jnp.bfloat16)

    # ---- packed heads: one 256->128 matmul, ReLU, one 128->128 matmul.
    hh = jnp.dot(h, wh1_ref[...], preferred_element_type=jnp.float32) + bh1_ref[...]
    hh = jnp.maximum(hh, 0.0).astype(jnp.bfloat16)

    # Dueling combine is folded into wq2/bq2, so this matmul directly yields
    # Q(s, a) in lanes [0, action_dim); remaining lanes are zero padding.
    q = jnp.dot(hh, wq2_ref[...], preferred_element_type=jnp.float32) + bq2_ref[...]
    out_ref[...] = q.astype(out_ref.dtype)


# ----------------------------------------------------------------------------
# parameter construction / packing
# ----------------------------------------------------------------------------
def init_dqn_params(key, state_dim, action_dim):
    """Init mirroring the PyTorch module (orthogonal weights, zero biases,
    LayerNorm gamma=1 / beta=0).  Weights are stored (in, out)."""
    ortho = jax.nn.initializers.orthogonal(scale=1.0)
    ks = jax.random.split(key, 6)
    return {
        "w1": ortho(ks[0], (state_dim, 256), jnp.float32),
        "b1": jnp.zeros((1, 256), jnp.float32),
        "g1": jnp.ones((1, 256), jnp.float32),
        "be1": jnp.zeros((1, 256), jnp.float32),
        "w2": ortho(ks[1], (256, 256), jnp.float32),
        "b2": jnp.zeros((1, 256), jnp.float32),
        "g2": jnp.ones((1, 256), jnp.float32),
        "be2": jnp.zeros((1, 256), jnp.float32),
        "wv1": ortho(ks[2], (256, 64), jnp.float32),
        "bv1": jnp.zeros((1, 64), jnp.float32),
        "wv2": ortho(ks[3], (64, 1), jnp.float32),
        "bv2": jnp.zeros((1, 1), jnp.float32),
        "wa1": ortho(ks[4], (256, 64), jnp.float32),
        "ba1": jnp.zeros((1, 64), jnp.float32),
        "wa2": ortho(ks[5], (64, action_dim), jnp.float32),
        "ba2": jnp.zeros((1, action_dim), jnp.float32),
    }


def pack_dqn_params(params, action_dim):
    """One-time packing of PyTorch-shaped params into the kernel layout.

    - head-1 weights concatenated (value | advantage) -> (256, 128)
    - head-2 weights packed block-diagonally with the (linear) dueling combine
      q = v + a - mean(a) folded in, padded to a lane-dense width of 128.
    - matmul weights cast to bf16; biases / LN params stay f32.
    """
    A = action_dim
    assert A <= HEAD_PAD, (
        f"pack_dqn_params assumes action_dim <= {HEAD_PAD}, got {A}")

    wv2 = params["wv2"]            # (64, 1)
    wa2 = params["wa2"]            # (64, A)
    bv2 = params["bv2"]            # (1, 1)
    ba2 = params["ba2"]            # (1, A)

    wh1 = jnp.concatenate([params["wv1"], params["wa1"]], axis=1)   # (256, 128)
    bh1 = jnp.concatenate([params["bv1"], params["ba1"]], axis=1)   # (1, 128)

    wa2c = wa2 - jnp.mean(wa2, axis=1, keepdims=True)               # (64, A)
    wq2 = jnp.zeros((HEAD_PAD, HEAD_PAD), jnp.float32)
    wq2 = wq2.at[:64, :A].set(jnp.broadcast_to(wv2, (64, A)))
    wq2 = wq2.at[64:, :A].set(wa2c)
    bq2 = jnp.zeros((1, HEAD_PAD), jnp.float32)
    bq2 = bq2.at[:, :A].set(bv2 + ba2 - jnp.mean(ba2, axis=1, keepdims=True))

    return {
        "w1": params["w1"].astype(jnp.bfloat16),
        "b1": params["b1"], "g1": params["g1"], "be1": params["be1"],
        "w2": params["w2"].astype(jnp.bfloat16),
        "b2": params["b2"], "g2": params["g2"], "be2": params["be2"],
        "wh1": wh1.astype(jnp.bfloat16), "bh1": bh1,
        "wq2": wq2.astype(jnp.bfloat16), "bq2": bq2,
    }


_PACKED_ORDER = (
    "w1", "b1", "g1", "be1",
    "w2", "b2", "g2", "be2",
    "wh1", "bh1", "wq2", "bq2",
)


# ----------------------------------------------------------------------------
# wrapper
# ----------------------------------------------------------------------------
@functools.partial(
    jax.jit, static_argnames=("action_dim", "block_b", "min_tiles", "out_dtype"))
def dqn_forward(x, packed, *, action_dim, block_b=2048, min_tiles=None,
                out_dtype=jnp.float32):
    """Fused dueling-DQN forward.

    x may be f32 or bf16 (store replay states as bf16 upstream to halve the
    input HBM read; no wrapper-side cast is added here).  out_dtype=bf16
    halves output writeback for pure action-selection inference; keep the f32
    default for TD-target / training paths.
    """
    B, S = x.shape

    if min_tiles is None:
        # >=2 grid steps on the "parallel" axis keeps both v7x TensorCores
        # busy; resolves to 1 on single-TC chips (v5e/v6e).
        min_tiles = _num_tensorcores()

    n_tiles, tb, b_pad = _choose_tiling(B, block_b, min_tiles)
    if b_pad != B:
        x = jnp.pad(x, ((0, b_pad - B), (0, 0)))
    grid = (n_tiles,)

    params_list = [packed[name] for name in _PACKED_ORDER]

    # Weights/biases: full-array, constant index_map, single-buffered -> stay
    # resident in VMEM across grid steps; only x / out are tiled over batch.
    const_specs = [_const_spec(p.shape) for p in params_list]
    in_specs = [pl.BlockSpec((tb, S), lambda i: (i, 0))] + const_specs
    out_spec = pl.BlockSpec((tb, HEAD_PAD), lambda i: (i, 0))

    flops = 2 * b_pad * (S * 256 + 256 * 256 + 256 * HEAD_PAD + HEAD_PAD * HEAD_PAD)
    param_bytes = sum(p.size * p.dtype.itemsize for p in params_list)
    out_itemsize = jnp.dtype(out_dtype).itemsize
    bytes_accessed = (b_pad * S * x.dtype.itemsize + param_bytes
                      + b_pad * HEAD_PAD * out_itemsize)

    out_full = pl.pallas_call(
        dqn_kernel,
        out_shape=jax.ShapeDtypeStruct((b_pad, HEAD_PAD), out_dtype),
        grid=grid,
        in_specs=in_specs,
        out_specs=out_spec,
        compiler_params=pltpu.CompilerParams(
            dimension_semantics=("parallel",),
        ),
        cost_estimate=pl.CostEstimate(
            flops=flops,
            transcendentals=2 * b_pad,
            bytes_accessed=bytes_accessed,
        ),
    )(x, *params_list)

    # Lane-dense slab -> (B, action_dim)
    return out_full[:B, :action_dim]


# ----------------------------------------------------------------------------
# plain-JAX reference (matches the PyTorch forward, f32)
# ----------------------------------------------------------------------------
def dqn_forward_ref(x, params):
    def ln(h, g, b):
        mu = jnp.mean(h, axis=-1, keepdims=True)
        var = jnp.mean((h - mu) ** 2, axis=-1, keepdims=True)
        return (h - mu) / jnp.sqrt(var + LN_EPS) * g + b

    h = jnp.maximum(ln(x @ params["w1"] + params["b1"], params["g1"], params["be1"]), 0.0)
    h = jnp.maximum(ln(h @ params["w2"] + params["b2"], params["g2"], params["be2"]), 0.0)
    v = jnp.maximum(h @ params["wv1"] + params["bv1"], 0.0) @ params["wv2"] + params["bv2"]
    a = jnp.maximum(h @ params["wa1"] + params["ba1"], 0.0) @ params["wa2"] + params["ba2"]
    return v + a - jnp.mean(a, axis=1, keepdims=True)


if __name__ == "__main__":
    STATE_DIM = 16
    ACTION_DIM = 8
    BATCH = 2

    key = jax.random.PRNGKey(0)
    k_x, k_p = jax.random.split(key)

    x = jax.random.normal(k_x, (BATCH, STATE_DIM), dtype=jnp.float32)
    params = init_dqn_params(k_p, STATE_DIM, ACTION_DIM)
    packed = pack_dqn_params(params, ACTION_DIM)

    out = dqn_forward(x, packed, action_dim=ACTION_DIM)
    out = jax.block_until_ready(out)

    ref = dqn_forward_ref(x, params)
    assert out.shape == (BATCH, ACTION_DIM), out.shape
    # bf16 matmul operands / bf16 trunk activations (f32 accumulation & LN
    # statistics) -> relaxed tolerance vs the pure-f32 reference.
    assert jnp.allclose(out, ref, atol=5e-2, rtol=5e-2), (out, ref)

    print("KERNEL_OK")
</pallas_src>

<mosaic_0001>
module attributes {stable_mosaic.version = 11 : i64} {
  func.func @dqn_kernel(%arg0: i32, %arg1: memref<16x16xf32, #tpu.memory_space<vmem>>, %arg2: memref<16x256xbf16, #tpu.memory_space<vmem>>, %arg3: memref<1x256xf32, #tpu.memory_space<vmem>>, %arg4: memref<1x256xf32, #tpu.memory_space<vmem>>, %arg5: memref<1x256xf32, #tpu.memory_space<vmem>>, %arg6: memref<256x256xbf16, #tpu.memory_space<vmem>>, %arg7: memref<1x256xf32, #tpu.memory_space<vmem>>, %arg8: memref<1x256xf32, #tpu.memory_space<vmem>>, %arg9: memref<1x256xf32, #tpu.memory_space<vmem>>, %arg10: memref<256x128xbf16, #tpu.memory_space<vmem>>, %arg11: memref<1x128xf32, #tpu.memory_space<vmem>>, %arg12: memref<128x128xbf16, #tpu.memory_space<vmem>>, %arg13: memref<1x128xf32, #tpu.memory_space<vmem>>, %arg14: memref<16x128xf32, #tpu.memory_space<vmem>>) attributes {dimension_semantics = [#tpu.dimension_semantics<parallel>], iteration_bounds = array<i64: 1>, scalar_prefetch = 0 : i64, scratch_operands = 0 : i64, tpu.core_type = #tpu.core_type<tc>, window_params = [{transform_indices = @transform_0, window_bounds = array<i64: 16, 16>}, {pipeline_mode = #tpu.pipeline_mode<synchronous>, transform_indices = @transform_1, window_bounds = array<i64: 16, 256>}, {pipeline_mode = #tpu.pipeline_mode<synchronous>, transform_indices = @transform_2, window_bounds = array<i64: 1, 256>}, {pipeline_mode = #tpu.pipeline_mode<synchronous>, transform_indices = @transform_3, window_bounds = array<i64: 1, 256>}, {pipeline_mode = #tpu.pipeline_mode<synchronous>, transform_indices = @transform_4, window_bounds = array<i64: 1, 256>}, {pipeline_mode = #tpu.pipeline_mode<synchronous>, transform_indices = @transform_5, window_bounds = array<i64: 256, 256>}, {pipeline_mode = #tpu.pipeline_mode<synchronous>, transform_indices = @transform_6, window_bounds = array<i64: 1, 256>}, {pipeline_mode = #tpu.pipeline_mode<synchronous>, transform_indices = @transform_7, window_bounds = array<i64: 1, 256>}, {pipeline_mode = #tpu.pipeline_mode<synchronous>, transform_indices = @transform_8, window_bounds = array<i64: 1, 256>}, {pipeline_mode = #tpu.pipeline_mode<synchronous>, transform_indices = @transform_9, window_bounds = array<i64: 256, 128>}, {pipeline_mode = #tpu.pipeline_mode<synchronous>, transform_indices = @transform_10, window_bounds = array<i64: 1, 128>}, {pipeline_mode = #tpu.pipeline_mode<synchronous>, transform_indices = @transform_11, window_bounds = array<i64: 128, 128>}, {pipeline_mode = #tpu.pipeline_mode<synchronous>, transform_indices = @transform_12, window_bounds = array<i64: 1, 128>}, {transform_indices = @transform_13, window_bounds = array<i64: 16, 128>}]} {
    %c0 = arith.constant 0 : index
    %c0_0 = arith.constant 0 : index
    %0 = vector.load %arg1[%c0, %c0_0] : memref<16x16xf32, #tpu.memory_space<vmem>>, vector<16x16xf32>
    %1 = arith.truncf %0 : vector<16x16xf32> to vector<16x16xbf16>
    %c0_1 = arith.constant 0 : index
    %c0_2 = arith.constant 0 : index
    %2 = vector.load %arg2[%c0_1, %c0_2] : memref<16x256xbf16, #tpu.memory_space<vmem>>, vector<16x256xbf16>
    %cst = arith.constant dense<0.000000e+00> : vector<16x256xf32>
    %3 = tpu.matmul %1, %2, %cst {dimension_numbers = #tpu.dot_dimension_numbers<[1], [0], [0], [1], [0, 0, 1, 1], [], []>} : vector<16x16xbf16>, vector<16x256xbf16>, vector<16x256xf32> -> vector<16x256xf32>
    %c0_3 = arith.constant 0 : index
    %c0_4 = arith.constant 0 : index
    %4 = vector.load %arg3[%c0_3, %c0_4] : memref<1x256xf32, #tpu.memory_space<vmem>>, vector<1x256xf32>
    %5 = vector.broadcast %4 : vector<1x256xf32> to vector<16x256xf32>
    %6 = arith.addf %3, %5 : vector<16x256xf32>
    %c0_5 = arith.constant 0 : index
    %c0_6 = arith.constant 0 : index
    %7 = vector.load %arg4[%c0_5, %c0_6] : memref<1x256xf32, #tpu.memory_space<vmem>>, vector<1x256xf32>
    %c0_7 = arith.constant 0 : index
    %c0_8 = arith.constant 0 : index
    %8 = vector.load %arg5[%c0_7, %c0_8] : memref<1x256xf32, #tpu.memory_space<vmem>>, vector<1x256xf32>
    %cst_9 = arith.constant dense<0.000000e+00> : vector<16xf32>
    %9 = vector.multi_reduction <add>, %6, %cst_9 [1] : vector<16x256xf32> to vector<16xf32>
    %10 = vector.shape_cast %9 : vector<16xf32> to vector<16x1xf32>
    %cst_10 = arith.constant 2.560000e+02 : f32
    %11 = vector.broadcast %cst_10 : f32 to vector<16x1xf32>
    %12 = arith.divf %10, %11 : vector<16x1xf32>
    %13 = vector.broadcast %12 : vector<16x1xf32> to vector<16x256xf32>
    %14 = arith.subf %6, %13 : vector<16x256xf32>
    %15 = arith.mulf %14, %14 : vector<16x256xf32>
    %cst_11 = arith.constant dense<0.000000e+00> : vector<16xf32>
    %16 = vector.multi_reduction <add>, %15, %cst_11 [1] : vector<16x256xf32> to vector<16xf32>
    %17 = vector.shape_cast %16 : vector<16xf32> to vector<16x1xf32>
    %cst_12 = arith.constant 2.560000e+02 : f32
    %18 = vector.broadcast %cst_12 : f32 to vector<16x1xf32>
    %19 = arith.divf %17, %18 : vector<16x1xf32>
    %cst_13 = arith.constant 9.99999974E-6 : f32
    %20 = vector.broadcast %cst_13 : f32 to vector<16x1xf32>
    %21 = arith.addf %19, %20 : vector<16x1xf32>
    %22 = math.rsqrt %21 : vector<16x1xf32>
    %23 = vector.broadcast %22 : vector<16x1xf32> to vector<16x256xf32>
    %24 = arith.mulf %14, %23 : vector<16x256xf32>
    %25 = vector.broadcast %7 : vector<1x256xf32> to vector<16x256xf32>
    %26 = arith.mulf %24, %25 : vector<16x256xf32>
    %27 = vector.broadcast %8 : vector<1x256xf32> to vector<16x256xf32>
    %28 = arith.addf %26, %27 : vector<16x256xf32>
    %cst_14 = arith.constant 0.000000e+00 : f32
    %29 = vector.broadcast %cst_14 : f32 to vector<16x256xf32>
    %30 = arith.maximumf %28, %29 : vector<16x256xf32>
    %31 = arith.truncf %30 : vector<16x256xf32> to vector<16x256xbf16>
    %c0_15 = arith.constant 0 : index
    %c0_16 = arith.constant 0 : index
    %32 = vector.load %arg6[%c0_15, %c0_16] : memref<256x256xbf16, #tpu.memory_space<vmem>>, vector<256x256xbf16>
    %cst_17 = arith.constant dense<0.000000e+00> : vector<16x256xf32>
    %33 = tpu.matmul %31, %32, %cst_17 {dimension_numbers = #tpu.dot_dimension_numbers<[1], [0], [0], [1], [0, 0, 1, 1], [], []>} : vector<16x256xbf16>, vector<256x256xbf16>, vector<16x256xf32> -> vector<16x256xf32>
    %c0_18 = arith.constant 0 : index
    %c0_19 = arith.constant 0 : index
    %34 = vector.load %arg7[%c0_18, %c0_19] : memref<1x256xf32, #tpu.memory_space<vmem>>, vector<1x256xf32>
    %35 = vector.broadcast %34 : vector<1x256xf32> to vector<16x256xf32>
    %36 = arith.addf %33, %35 : vector<16x256xf32>
    %c0_20 = arith.constant 0 : index
    %c0_21 = arith.constant 0 : index
    %37 = vector.load %arg8[%c0_20, %c0_21] : memref<1x256xf32, #tpu.memory_space<vmem>>, vector<1x256xf32>
    %c0_22 = arith.constant 0 : index
    %c0_23 = arith.constant 0 : index
    %38 = vector.load %arg9[%c0_22, %c0_23] : memref<1x256xf32, #tpu.memory_space<vmem>>, vector<1x256xf32>
    %cst_24 = arith.constant dense<0.000000e+00> : vector<16xf32>
    %39 = vector.multi_reduction <add>, %36, %cst_24 [1] : vector<16x256xf32> to vector<16xf32>
    %40 = vector.shape_cast %39 : vector<16xf32> to vector<16x1xf32>
    %cst_25 = arith.constant 2.560000e+02 : f32
    %41 = vector.broadcast %cst_25 : f32 to vector<16x1xf32>
    %42 = arith.divf %40, %41 : vector<16x1xf32>
    %43 = vector.broadcast %42 : vector<16x1xf32> to vector<16x256xf32>
    %44 = arith.subf %36, %43 : vector<16x256xf32>
    %45 = arith.mulf %44, %44 : vector<16x256xf32>
    %cst_26 = arith.constant dense<0.000000e+00> : vector<16xf32>
    %46 = vector.multi_reduction <add>, %45, %cst_26 [1] : vector<16x256xf32> to vector<16xf32>
    %47 = vector.shape_cast %46 : vector<16xf32> to vector<16x1xf32>
    %cst_27 = arith.constant 2.560000e+02 : f32
    %48 = vector.broadcast %cst_27 : f32 to vector<16x1xf32>
    %49 = arith.divf %47, %48 : vector<16x1xf32>
    %cst_28 = arith.constant 9.99999974E-6 : f32
    %50 = vector.broadcast %cst_28 : f32 to vector<16x1xf32>
    %51 = arith.addf %49, %50 : vector<16x1xf32>
    %52 = math.rsqrt %51 : vector<16x1xf32>
    %53 = vector.broadcast %52 : vector<16x1xf32> to vector<16x256xf32>
    %54 = arith.mulf %44, %53 : vector<16x256xf32>
    %55 = vector.broadcast %37 : vector<1x256xf32> to vector<16x256xf32>
    %56 = arith.mulf %54, %55 : vector<16x256xf32>
    %57 = vector.broadcast %38 : vector<1x256xf32> to vector<16x256xf32>
    %58 = arith.addf %56, %57 : vector<16x256xf32>
    %cst_29 = arith.constant 0.000000e+00 : f32
    %59 = vector.broadcast %cst_29 : f32 to vector<16x256xf32>
    %60 = arith.maximumf %58, %59 : vector<16x256xf32>
    %61 = arith.truncf %60 : vector<16x256xf32> to vector<16x256xbf16>
    %c0_30 = arith.constant 0 : index
    %c0_31 = arith.constant 0 : index
    %62 = vector.load %arg10[%c0_30, %c0_31] : memref<256x128xbf16, #tpu.memory_space<vmem>>, vector<256x128xbf16>
    %cst_32 = arith.constant dense<0.000000e+00> : vector<16x128xf32>
    %63 = tpu.matmul %61, %62, %cst_32 {dimension_numbers = #tpu.dot_dimension_numbers<[1], [0], [0], [1], [0, 0, 1, 1], [], []>} : vector<16x256xbf16>, vector<256x128xbf16>, vector<16x128xf32> -> vector<16x128xf32>
    %c0_33 = arith.constant 0 : index
    %c0_34 = arith.constant 0 : index
    %64 = vector.load %arg11[%c0_33, %c0_34] : memref<1x128xf32, #tpu.memory_space<vmem>>, vector<1x128xf32>
    %65 = vector.broadcast %64 : vector<1x128xf32> to vector<16x128xf32>
    %66 = arith.addf %63, %65 : vector<16x128xf32>
    %cst_35 = arith.constant 0.000000e+00 : f32
    %67 = vector.broadcast %cst_35 : f32 to vector<16x128xf32>
    %68 = arith.maximumf %66, %67 : vector<16x128xf32>
    %69 = arith.truncf %68 : vector<16x128xf32> to vector<16x128xbf16>
    %c0_36 = arith.constant 0 : index
    %c0_37 = arith.constant 0 : index
    %70 = vector.load %arg12[%c0_36, %c0_37] : memref<128x128xbf16, #tpu.memory_space<vmem>>, vector<128x128xbf16>
    %cst_38 = arith.constant dense<0.000000e+00> : vector<16x128xf32>
    %71 = tpu.matmul %69, %70, %cst_38 {dimension_numbers = #tpu.dot_dimension_numbers<[1], [0], [0], [1], [0, 0, 1, 1], [], []>} : vector<16x128xbf16>, vector<128x128xbf16>, vector<16x128xf32> -> vector<16x128xf32>
    %c0_39 = arith.constant 0 : index
    %c0_40 = arith.constant 0 : index
    %72 = vector.load %arg13[%c0_39, %c0_40] : memref<1x128xf32, #tpu.memory_space<vmem>>, vector<1x128xf32>
    %73 = vector.broadcast %72 : vector<1x128xf32> to vector<16x128xf32>
    %74 = arith.addf %71, %73 : vector<16x128xf32>
    %c0_41 = arith.constant 0 : index
    %c0_42 = arith.constant 0 : index
    %75 = vector.load %arg14[%c0_41, %c0_42] : memref<16x128xf32, #tpu.memory_space<vmem>>, vector<16x128xf32>
    tpu.vector_store %arg14[%c0_41, %c0_42], %74 {strides = array<i32>} : memref<16x128xf32, #tpu.memory_space<vmem>>, vector<16x128xf32>,
    return
  }
  func.func @transform_0(%arg0: i32) -> (i32, i32) {
    %c0_i32 = arith.constant 0 : i32
    %c0_i32_0 = arith.constant 0 : i32
    return %arg0, %c0_i32 : i32, i32
  }
  func.func @transform_1(%arg0: i32) -> (i32, i32) {
    %c0_i32 = arith.constant 0 : i32
    %c0_i32_0 = arith.constant 0 : i32
    %c0_i32_1 = arith.constant 0 : i32
    return %c0_i32, %c0_i32_0 : i32, i32
  }
  func.func @transform_2(%arg0: i32) -> (i32, i32) {
    %c0_i32 = arith.constant 0 : i32
    %c0_i32_0 = arith.constant 0 : i32
    %c0_i32_1 = arith.constant 0 : i32
    return %c0_i32, %c0_i32_0 : i32, i32
  }
  func.func @transform_3(%arg0: i32) -> (i32, i32) {
    %c0_i32 = arith.constant 0 : i32
    %c0_i32_0 = arith.constant 0 : i32
    %c0_i32_1 = arith.constant 0 : i32
    return %c0_i32, %c0_i32_0 : i32, i32
  }
  func.func @transform_4(%arg0: i32) -> (i32, i32) {
    %c0_i32 = arith.constant 0 : i32
    %c0_i32_0 = arith.constant 0 : i32
    %c0_i32_1 = arith.constant 0 : i32
    return %c0_i32, %c0_i32_0 : i32, i32
  }
  func.func @transform_5(%arg0: i32) -> (i32, i32) {
    %c0_i32 = arith.constant 0 : i32
    %c0_i32_0 = arith.constant 0 : i32
    %c0_i32_1 = arith.constant 0 : i32
    return %c0_i32, %c0_i32_0 : i32, i32
  }
  func.func @transform_6(%arg0: i32) -> (i32, i32) {
    %c0_i32 = arith.constant 0 : i32
    %c0_i32_0 = arith.constant 0 : i32
    %c0_i32_1 = arith.constant 0 : i32
    return %c0_i32, %c0_i32_0 : i32, i32
  }
  func.func @transform_7(%arg0: i32) -> (i32, i32) {
    %c0_i32 = arith.constant 0 : i32
    %c0_i32_0 = arith.constant 0 : i32
    %c0_i32_1 = arith.constant 0 : i32
    return %c0_i32, %c0_i32_0 : i32, i32
  }
  func.func @transform_8(%arg0: i32) -> (i32, i32) {
    %c0_i32 = arith.constant 0 : i32
    %c0_i32_0 = arith.constant 0 : i32
    %c0_i32_1 = arith.constant 0 : i32
    return %c0_i32, %c0_i32_0 : i32, i32
  }
  func.func @transform_9(%arg0: i32) -> (i32, i32) {
    %c0_i32 = arith.constant 0 : i32
    %c0_i32_0 = arith.constant 0 : i32
    %c0_i32_1 = arith.constant 0 : i32
    return %c0_i32, %c0_i32_0 : i32, i32
  }
  func.func @transform_10(%arg0: i32) -> (i32, i32) {
    %c0_i32 = arith.constant 0 : i32
    %c0_i32_0 = arith.constant 0 : i32
    %c0_i32_1 = arith.constant 0 : i32
    return %c0_i32, %c0_i32_0 : i32, i32
  }
  func.func @transform_11(%arg0: i32) -> (i32, i32) {
    %c0_i32 = arith.constant 0 : i32
    %c0_i32_0 = arith.constant 0 : i32
    %c0_i32_1 = arith.constant 0 : i32
    return %c0_i32, %c0_i32_0 : i32, i32
  }
  func.func @transform_12(%arg0: i32) -> (i32, i32) {
    %c0_i32 = arith.constant 0 : i32
    %c0_i32_0 = arith.constant 0 : i32
    %c0_i32_1 = arith.constant 0 : i32
    return %c0_i32, %c0_i32_0 : i32, i32
  }
  func.func @transform_13(%arg0: i32) -> (i32, i32) {
    %c0_i32 = arith.constant 0 : i32
    %c0_i32_0 = arith.constant 0 : i32
    return %arg0, %c0_i32 : i32, i32
  }
}

</mosaic_0001>

<bundles_post_ra>
// kernel: dqn_forward.1
= control target key start
LH: loop header
LB: loop body
LE: loop exit
PB: predicated region body
PF: predicated region fallthrough
CT: control target
= control target key end

     0   :  { %18 = vsyncpa [#allocation3], 0  ;;  %s1709_s0 = inlined_call_operand.vmem [shape: f32[16,16], index: 0, kind: input, shape index: {}]   ;;  %s1710_s1 = inlined_call_operand.hbm [shape: bf16[16,256], index: 1, kind: input, shape index: {}]   ;;  %s1711_s2 = inlined_call_operand.hbm [shape: f32[1,256], index: 2, kind: input, shape index: {}]   ;;  %s1712_s3 = inlined_call_operand.hbm [shape: f32[1,256], index: 3, kind: input, shape index: {}]   ;;  %s1713_s4 = inlined_call_operand.hbm [shape: f32[1,256], index: 4, kind: input, shape index: {}]   ;;  %s1714_s5 = inlined_call_operand.hbm [shape: bf16[256,256], index: 5, kind: input, shape index: {}]   ;;  %s1715_s6 = inlined_call_operand.hbm [shape: f32[1,256], index: 6, kind: input, shape index: {}]   ;;  %s1716_s7 = inlined_call_operand.hbm [shape: f32[1,256], index: 7, kind: input, shape index: {}]   ;;  %s1717_s8 = inlined_call_operand.hbm [shape: f32[1,256], index: 8, kind: input, shape index: {}]   ;;  %s1718_s9 = inlined_call_operand.hbm [shape: bf16[256,128], index: 9, kind: input, shape index: {}]   ;;  %s1719_s10 = inlined_call_operand.hbm [shape: f32[1,128], index: 10, kind: input, shape index: {}]   ;;  %s1720_s11 = inlined_call_operand.vmem [shape: bf16[128,128], index: 11, kind: input, shape index: {}]   ;;  %s1721_s12 = inlined_call_operand.hbm [shape: f32[1,128], index: 12, kind: input, shape index: {}]   ;;  %s1722_s13 = inlined_call_operand.vmem [shape: f32[16,128], index: 13, kind: output, shape index: {}]  }
   0x1   :  { %19 = vsyncpa [#allocation5], 0 }
   0x2   :  { %20 = vsyncpa [#allocation8], 0 }
   0x3   :  { %21 = vsyncpa [#allocation11], 0 }
   0x4   :  { %22 = vsyncpa [#allocation14], 0 }
   0x5   :  { %23 = vsyncpa [#allocation17], 0  ;;  %s1410_s25 = smov [#allocation4]   ;;  %s1411_s27 = smov [#allocation7]  }
   0x6   :  { %s44_s26 = sshll.u32 %s1410_s25, 4  ;;  %s64_s28 = sshll.u32 %s1411_s27, 4  ;;  %s45_s26 = int_to_ptr.vmem [resolvable:$true] %s44_s26  ;;  %s65_s28 = int_to_ptr.vmem [resolvable:$true] %s64_s28 }
   0x7   :  { %s1156_s14 = scalar_lea.hbm %s1711_s2, 32 }
   0x8   :  { %p1157_p0 = scmp.ne.s32.totalorder %s1711_s2, %s1156_s14  ;;  %p1160_p1 = scmp.lt.u32.totalorder %s1156_s14, %s1711_s2 }
   0xa   :  { %p1162_p2 = pnand %p1160_p1, %p1157_p0 }
   0xc   :  { %1165 = shalt.err (!%p1162_p2)
}
   0xd   :  { %s1166_s19 = scalar_lea.vmem %s45_s26, 32  ;;  %p1171_p4 = scmp.lt.s32.totalorder %s45_s26, %s45_s26 }
   0xe   :  { %p1167_p3 = scmp.ne.s32.totalorder %s45_s26, %s1166_s19  ;;  %p1172_p5 = scmp.lt.s32.totalorder %s1166_s19, %s1166_s19 }
  0x10   :  { %p1173_p6 = por %p1172_p5, %p1171_p4 }
  0x12   :  { %p1174_p7 = pnand %p1173_p6, %p1167_p3 }
  0x14   :  { %1177 = shalt.err (!%p1174_p7)
}
  0x15   :  { %47 = dma.hbm_to_vmem [thread:$0]  %s1711_s2, 32, %s45_s26, [#allocation5]  }
  0x16   :  { %s1178_s24 = scalar_lea.hbm %s1713_s4, 32 }
  0x17   :  { %p1179_p8 = scmp.ne.s32.totalorder %s1713_s4, %s1178_s24  ;;  %p1182_p9 = scmp.lt.u32.totalorder %s1178_s24, %s1713_s4 }
  0x19   :  { %p1184_p10 = pnand %p1182_p9, %p1179_p8 }
  0x1b   :  { %1187 = shalt.err (!%p1184_p10)
}
  0x1c   :  { %s1188_s14 = scalar_lea.vmem %s65_s28, 32  ;;  %p1193_p12 = scmp.lt.s32.totalorder %s65_s28, %s65_s28 }
  0x1d   :  { %p1189_p11 = scmp.ne.s32.totalorder %s65_s28, %s1188_s14  ;;  %p1194_p13 = scmp.lt.s32.totalorder %s1188_s14, %s1188_s14 }
  0x1f   :  { %p1195_p0 = por %p1194_p13, %p1193_p12 }
  0x21   :  { %p1196_p1 = pnand %p1195_p0, %p1189_p11 }
  0x23   :  { %1199 = shalt.err (!%p1196_p1)
}
  0x24   :  { %67 = dma.hbm_to_vmem [thread:$0]  %s1713_s4, 32, %s65_s28, [#allocation8]  }
  0x25   :  { %s1412_s15 = smov [#allocation10]   ;;  %s1413_s17 = smov [#allocation13]  }
  0x26   :  { %s86_s16 = sshll.u32 %s1412_s15, 4  ;;  %s106_s18 = sshll.u32 %s1413_s17, 4  ;;  %s87_s16 = int_to_ptr.vmem [resolvable:$true] %s86_s16  ;;  %s107_s18 = int_to_ptr.vmem [resolvable:$true] %s106_s18 }
  0x27   :  { %s1200_s21 = scalar_lea.hbm %s1715_s6, 32 }
  0x28   :  { %p1201_p2 = scmp.ne.s32.totalorder %s1715_s6, %s1200_s21  ;;  %p1204_p3 = scmp.lt.u32.totalorder %s1200_s21, %s1715_s6 }
  0x2a   :  { %p1206_p4 = pnand %p1204_p3, %p1201_p2 }
  0x2c   :  { %1209 = shalt.err (!%p1206_p4)
}
  0x2d   :  { %s1210_s4 = scalar_lea.vmem %s87_s16, 32  ;;  %p1215_p6 = scmp.lt.s32.totalorder %s87_s16, %s87_s16 }
  0x2e   :  { %p1211_p5 = scmp.ne.s32.totalorder %s87_s16, %s1210_s4  ;;  %p1216_p7 = scmp.lt.s32.totalorder %s1210_s4, %s1210_s4 }
  0x30   :  { %p1217_p8 = por %p1216_p7, %p1215_p6 }
  0x32   :  { %p1218_p9 = pnand %p1217_p8, %p1211_p5 }
  0x34   :  { %1221 = shalt.err (!%p1218_p9)
}
  0x35   :  { %89 = dma.hbm_to_vmem [thread:$0]  %s1715_s6, 32, %s87_s16, [#allocation11]  }
  0x36   :  { %s1222_s14 = scalar_lea.hbm %s1717_s8, 32 }
  0x37   :  { %p1223_p10 = scmp.ne.s32.totalorder %s1717_s8, %s1222_s14  ;;  %p1226_p11 = scmp.lt.u32.totalorder %s1222_s14, %s1717_s8 }
  0x39   :  { %p1228_p12 = pnand %p1226_p11, %p1223_p10 }
  0x3b   :  { %1231 = shalt.err (!%p1228_p12)
}
  0x3c   :  { %s1232_s19 = scalar_lea.vmem %s107_s18, 32  ;;  %p1237_p0 = scmp.lt.s32.totalorder %s107_s18, %s107_s18 }
  0x3d   :  { %p1233_p13 = scmp.ne.s32.totalorder %s107_s18, %s1232_s19  ;;  %p1238_p1 = scmp.lt.s32.totalorder %s1232_s19, %s1232_s19 }
  0x3f   :  { %p1239_p2 = por %p1238_p1, %p1237_p0 }
  0x41   :  { %p1240_p3 = pnand %p1239_p2, %p1233_p13 }
  0x43   :  { %1243 = shalt.err (!%p1240_p3)
}
  0x44   :  { %109 = dma.hbm_to_vmem [thread:$0]  %s1717_s8, 32, %s107_s18, [#allocation14]  }
  0x45   :  { %s1414_s20 = smov [#allocation16]   ;;  %s1415_s22 = smov [#allocation2]  }
  0x46   :  { %s128_s21 = sshll.u32 %s1414_s20, 4  ;;  %s31_s23 = sshll.u32 %s1415_s22, 4  ;;  %s129_s21 = int_to_ptr.vmem [resolvable:$true] %s128_s21  ;;  %s1546_s23 = int_to_ptr.vmem [resolvable:$true] %s31_s23 }
  0x47   :  { %s1244_s4 = scalar_lea.hbm %s1719_s10, 16 }
  0x48   :  { %p1245_p4 = scmp.ne.s32.totalorder %s1719_s10, %s1244_s4  ;;  %p1248_p5 = scmp.lt.u32.totalorder %s1244_s4, %s1719_s10 }
  0x4a   :  { %p1250_p6 = pnand %p1248_p5, %p1245_p4 }
  0x4c   :  { %1253 = shalt.err (!%p1250_p6)
}
  0x4d   :  { %s1254_s8 = scalar_lea.vmem %s129_s21, 16  ;;  %s1258_s18 = scalar_lea.vmem %s129_s21, 32 }
  0x4e   :  { %p1255_p7 = scmp.ne.s32.totalorder %s129_s21, %s1254_s8  ;;  %p1259_p8 = scmp.lt.s32.totalorder %s129_s21, %s129_s21 }
  0x4f   :  { %p1260_p9 = scmp.lt.s32.totalorder %s1258_s18, %s1254_s8 }
  0x51   :  { %p1261_p10 = por %p1260_p9, %p1259_p8 }
  0x53   :  { %p1262_p11 = pnand %p1261_p10, %p1255_p7 }
  0x55   :  { %1265 = shalt.err (!%p1262_p11)
}
  0x56   :  { %131 = dma.hbm_to_vmem [thread:$0]  %s1719_s10, 16, %s129_s21, [#allocation17]  }
  0x57   :  { %s1266_s17 = scalar_lea.hbm %s1710_s1, 256 }
  0x58   :  { %p1267_p12 = scmp.ne.s32.totalorder %s1710_s1, %s1266_s17  ;;  %p1270_p13 = scmp.lt.u32.totalorder %s1266_s17, %s1710_s1 }
  0x5a   :  { %p1272_p0 = pnand %p1270_p13, %p1267_p12 }
  0x5c   :  { %1275 = shalt.err (!%p1272_p0)
}
  0x5d   :  { %s1276_s22 = scalar_lea.vmem %s1546_s23, 256  ;;  %p1281_p2 = scmp.lt.s32.totalorder %s1546_s23, %s1546_s23 }
  0x5e   :  { %p1277_p1 = scmp.ne.s32.totalorder %s1546_s23, %s1276_s22  ;;  %p1282_p3 = scmp.lt.s32.totalorder %s1276_s22, %s1276_s22 }
  0x60   :  { %p1283_p4 = por %p1282_p3, %p1281_p2 }
  0x62   :  { %p1284_p5 = pnand %p1283_p4, %p1277_p1 }
  0x64   :  { %1287 = shalt.err (!%p1284_p5)
}
  0x65   :  { %s1416_s10 = smov 128   ;;  %s1417_s21 = smov 8  }
  0x66   :  { %37 = dma.hbm_to_vmem [thread:$0]  %s1710_s1, 256, %s1546_s23, [#allocation3], %s1416_s10, %s1416_s10, %s1417_s21  }
  0x67   :  { %s1418_s4 = smov [#allocation6]   ;;  %s1419_s27 = smov [#allocation9]  }
  0x68   :  { %s54_s28 = sshll.u32 %s1418_s4, 4  ;;  %s73_s29 = sshll.u32 %s1419_s27, 4  ;;  %s55_s28 = int_to_ptr.vmem [resolvable:$true] %s54_s28  ;;  %s1580_s29 = int_to_ptr.vmem [resolvable:$true] %s73_s29 }
  0x69   :  { %s1288_s18 = scalar_lea.hbm %s1712_s3, 32 }
  0x6a   :  { %p1289_p6 = scmp.ne.s32.totalorder %s1712_s3, %s1288_s18  ;;  %p1292_p7 = scmp.lt.u32.totalorder %s1288_s18, %s1712_s3 }
  0x6c   :  { %p1294_p8 = pnand %p1292_p7, %p1289_p6 }
  0x6e   :  { %1297 = shalt.err (!%p1294_p8)
}
  0x6f   :  { %s1298_s1 = scalar_lea.vmem %s55_s28, 32  ;;  %p1303_p10 = scmp.lt.s32.totalorder %s55_s28, %s55_s28 }
  0x70   :  { %p1299_p9 = scmp.ne.s32.totalorder %s55_s28, %s1298_s1  ;;  %p1304_p11 = scmp.lt.s32.totalorder %s1298_s1, %s1298_s1 }
  0x72   :  { %p1305_p12 = por %p1304_p11, %p1303_p10 }
  0x74   :  { %p1306_p13 = pnand %p1305_p12, %p1299_p9 }
  0x76   :  { %1309 = shalt.err (!%p1306_p13)
}
  0x77   :  { %57 = dma.hbm_to_vmem [thread:$0]  %s1712_s3, 32, %s55_s28, [#allocation5]  }
  0x78   :  { %s1310_s16 = scalar_lea.hbm %s1714_s5, 4096 }
  0x79   :  { %p1311_p0 = scmp.ne.s32.totalorder %s1714_s5, %s1310_s16  ;;  %p1314_p1 = scmp.lt.u32.totalorder %s1310_s16, %s1714_s5 }
  0x7b   :  { %p1316_p2 = pnand %p1314_p1, %p1311_p0 }
  0x7d   :  { %1319 = shalt.err (!%p1316_p2)
}
  0x7e   :  { %s1320_s4 = scalar_lea.vmem %s1580_s29, 4096  ;;  %p1325_p4 = scmp.lt.s32.totalorder %s1580_s29, %s1580_s29 }
  0x7f   :  { %p1321_p3 = scmp.ne.s32.totalorder %s1580_s29, %s1320_s4  ;;  %p1326_p5 = scmp.lt.s32.totalorder %s1320_s4, %s1320_s4 }
  0x81   :  { %p1327_p6 = por %p1326_p5, %p1325_p4 }
  0x83   :  { %p1328_p7 = pnand %p1327_p6, %p1321_p3 }
  0x85   :  { %1331 = shalt.err (!%p1328_p7)
}
  0x86   :  { %79 = dma.hbm_to_vmem [thread:$0]  %s1714_s5, 4096, %s1580_s29, [#allocation8], %s1416_s10, %s1416_s10, %s1417_s21  }
  0x87   :  { %s1420_s27 = smov [#allocation12]   ;;  %s1421_s8 = smov [#allocation15]  }
  0x88   :  { %s96_s30 = sshll.u32 %s1420_s27, 4  ;;  %s115_s18 = sshll.u32 %s1421_s8, 4  ;;  %s97_s30 = int_to_ptr.vmem [resolvable:$true] %s96_s30  ;;  %s1614_s18 = int_to_ptr.vmem [resolvable:$true] %s115_s18 }
  0x89   :  { %s1332_s26 = scalar_lea.hbm %s1716_s7, 32 }
  0x8a   :  { %p1333_p8 = scmp.ne.s32.totalorder %s1716_s7, %s1332_s26  ;;  %p1336_p9 = scmp.lt.u32.totalorder %s1332_s26, %s1716_s7 }
  0x8c   :  { %p1338_p10 = pnand %p1336_p9, %p1333_p8 }
  0x8e   :  { %1341 = shalt.err (!%p1338_p10)
}
  0x8f   :  { %s1342_s5 = scalar_lea.vmem %s97_s30, 32  ;;  %p1347_p12 = scmp.lt.s32.totalorder %s97_s30, %s97_s30 }
  0x90   :  { %p1343_p11 = scmp.ne.s32.totalorder %s97_s30, %s1342_s5  ;;  %p1348_p13 = scmp.lt.s32.totalorder %s1342_s5, %s1342_s5 }
  0x92   :  { %p1349_p0 = por %p1348_p13, %p1347_p12 }
  0x94   :  { %p1350_p1 = pnand %p1349_p0, %p1343_p11 }
  0x96   :  { %1353 = shalt.err (!%p1350_p1)
}
  0x97   :  { %99 = dma.hbm_to_vmem [thread:$0]  %s1716_s7, 32, %s97_s30, [#allocation11]  }
  0x98   :  { %s1354_s6 = scalar_lea.hbm %s1718_s9, 2048 }
  0x99   :  { %p1355_p2 = scmp.ne.s32.totalorder %s1718_s9, %s1354_s6  ;;  %p1358_p3 = scmp.lt.u32.totalorder %s1354_s6, %s1718_s9 }
  0x9b   :  { %p1360_p4 = pnand %p1358_p3, %p1355_p2 }
  0x9d   :  { %1363 = shalt.err (!%p1360_p4)
}
  0x9e   :  { %s1364_s25 = scalar_lea.vmem %s1614_s18, 2048  ;;  %p1369_p6 = scmp.lt.s32.totalorder %s1614_s18, %s1614_s18 }
  0x9f   :  { %p1365_p5 = scmp.ne.s32.totalorder %s1614_s18, %s1364_s25  ;;  %p1370_p7 = scmp.lt.s32.totalorder %s1364_s25, %s1364_s25 }
  0xa1   :  { %p1371_p8 = por %p1370_p7, %p1369_p6 }
  0xa3   :  { %p1372_p9 = pnand %p1371_p8, %p1365_p5 }
  0xa5   :  { %1375 = shalt.err (!%p1372_p9)
}
  0xa6   :  { %s1422_s7 = smov 64   ;;  %s1423_s4 = smov 4  }
  0xa7   :  { %121 = dma.hbm_to_vmem [thread:$0]  %s1718_s9, 2048, %s1614_s18, [#allocation14], %s1422_s7, %s1422_s7, %s1423_s4  }
  0xa8   :  { %s1424_s27 = smov [#allocation18]   ;;  %s1376_s2 = scalar_lea.hbm %s1721_s12, 16 }
  0xa9   :  { %s140_s30 = sshll.u32 %s1424_s27, 4  ;;  %p1377_p10 = scmp.ne.s32.totalorder %s1721_s12, %s1376_s2  ;;  %s141_s30 = int_to_ptr.vmem [resolvable:$true] %s140_s30 }
  0xaa   :  { %p1380_p11 = scmp.lt.u32.totalorder %s1376_s2, %s1721_s12 }
  0xac   :  { %p1382_p12 = pnand %p1380_p11, %p1377_p10 }
  0xae   :  { %1385 = shalt.err (!%p1382_p12)
}
  0xaf   :  { %s1386_s17 = scalar_lea.vmem %s141_s30, 16  ;;  %s1390_s9 = scalar_lea.vmem %s141_s30, 32 }
  0xb0   :  { %p1387_p13 = scmp.ne.s32.totalorder %s141_s30, %s1386_s17  ;;  %p1391_p0 = scmp.lt.s32.totalorder %s141_s30, %s141_s30 }
  0xb1   :  { %p1392_p1 = scmp.lt.s32.totalorder %s1390_s9, %s1386_s17 }
  0xb3   :  { %p1393_p2 = por %p1392_p1, %p1391_p0 }
  0xb5   :  { %p1394_p3 = pnand %p1393_p2, %p1387_p13 }
  0xb7   :  { %1397 = shalt.err (!%p1394_p3)
}
  0xb8   :  { %143 = dma.hbm_to_vmem [thread:$0]  %s1721_s12, 16, %s141_s30, [#allocation17]  }
  0xb9   :  { %1398 = dma.done.wait [#allocation3], 256  }
  0xba   :  { %1399 = vsyncadd [#allocation3], 4294967040 }
  0xbb   :  { %1400 = dma.done.wait [#allocation5], 64  }
  0xbc   :  { %1401 = vsyncadd [#allocation5], 4294967232 }
  0xbd   :  { %1402 = dma.done.wait [#allocation8], 4128  }
  0xbe   :  { %1403 = vsyncadd [#allocation8], 4294963168 }
  0xbf   :  { %1404 = dma.done.wait [#allocation11], 64  }
  0xc0   :  { %1405 = vsyncadd [#allocation11], 4294967232 }
  0xc1   :  { %1406 = dma.done.wait [#allocation14], 2080  }
  0xc2   :  { %1407 = vsyncadd [#allocation14], 4294965216 }
  0xc3   :  { %1408 = dma.done.wait [#allocation17], 32  }
  0xc4   :  { %1409 = vsyncadd [#allocation17], 4294967264  ;;  %v1425_v0 = vmov 0   ;;  %v1073_v1 = vld [vmem:[#allocation2 + $0x4] ss:$8 sps:$4 sm:$0xff]   ;;  %vm205_vm0 = vcmask 130048   ;;  %v185_v6 = vlaneseq }
  0xc5   :  { %241 = vmatprep.mubr.bf16.mxu0 %v1425_v0  ;;  %v1075_v2 = vld [vmem:[#allocation2] ss:$8 sps:$4 sm:$0xff]   ;;  %209 = vmatprep.subr.bf16.mxu0 %v1073_v1  ;;  %v183_v9 = vld [vmem:[#allocation4] sm:$0x3]  ;;  %vm1427_vm1 = vmmov 0  }
  0xc6   :  { %v178_v3 = vld [vmem:[%s1709_s0] sm:$0xff]  ;;  %v179_v4 = vld [vmem:[%s1709_s0 + $0x8] sm:$0xff]  ;;  %210 = vmatpush1.bf16.msra.mxu0 %v1075_v2  ;;  %v186_v7 = vshrl.u32 %v185_v6, 7 }
  0xc7   :  { %v180_v5 = vpack.c.bf16 %v179_v4, %v178_v3  ;;  %v1076_v23 = vld [vmem:[#allocation9 + $0x4] ss:$8 sps:$4 sm:$0xff]   ;;  %v1078_v24 = vld [vmem:[#allocation9] ss:$8 sps:$4 sm:$0xff]   ;;  %v1079_v25 = vld [vmem:[#allocation9 + $0x14] ss:$8 sps:$4 sm:$0xff]  }
  0xc8   :  { %v1663_v8 = vsub.s32 0, %v186_v7  ;;  %v1665_v10 = vsub.s32 1, %v186_v7  ;;  %527 = vmatprep.subr.bf16.mxu1 %v1076_v23  ;;  %v1081_v26 = vld [vmem:[#allocation9 + $0x10] ss:$8 sps:$4 sm:$0xff]   ;;  %v1082_v27 = vld [vmem:[#allocation9 + $0x24] ss:$8 sps:$4 sm:$0xff]  }
  0xc9   :  { %945 = vmatmul.mubr.msk.bf16.vlgmr.msra.gmra.mrb[0].mxu0 %vm205_vm0, %v180_v5  ;;  %528 = vmatpush1.bf16.msra.mxu1 %v1078_v24  ;;  %v1084_v28 = vld [vmem:[#allocation9 + $0x20] ss:$8 sps:$4 sm:$0xff]   ;;  %v1085_v29 = vld [vmem:[#allocation9 + $0x34] ss:$8 sps:$4 sm:$0xff]   ;;  %v1087_v30 = vld [vmem:[#allocation9 + $0x30] ss:$8 sps:$4 sm:$0xff]  }
  0xca   :  { %v188_v11 = vrot.slane %v183_v9, %v1663_v8  ;;  %v192_v12 = vrot.slane %v183_v9, %v1665_v10  ;;  %529 = vmatprep.subr.bf16.mxu1 %v1079_v25  ;;  %v1088_v31 = vld [vmem:[#allocation9 + $0x44] ss:$8 sps:$4 sm:$0xff]   ;;  %v1090_v32 = vld [vmem:[#allocation9 + $0x40] ss:$8 sps:$4 sm:$0xff]   ;;  %v1091_v33 = vld [vmem:[#allocation9 + $0x54] ss:$8 sps:$4 sm:$0xff]  }
  0xcb   :  { %v1093_v34 = vld [vmem:[#allocation9 + $0x50] ss:$8 sps:$4 sm:$0xff]   ;;  %v1094_v35 = vld [vmem:[#allocation9 + $0x64] ss:$8 sps:$4 sm:$0xff]   ;;  %v1096_v36 = vld [vmem:[#allocation9 + $0x60] ss:$8 sps:$4 sm:$0xff]  }
  0xcc   :  { %v1097_v37 = vld [vmem:[#allocation9 + $0x74] ss:$8 sps:$4 sm:$0xff]   ;;  %v1099_v38 = vld [vmem:[#allocation9 + $0x70] ss:$8 sps:$4 sm:$0xff]   ;;  %v1100_v39 = vld [vmem:[#allocation9 + $0x84] ss:$8 sps:$4 sm:$0xff]  }
  0xcd   :  { %530 = vmatpush1.bf16.msra.mxu1 %v1081_v26  ;;  %v1102_v40 = vld [vmem:[#allocation9 + $0x80] ss:$8 sps:$4 sm:$0xff]   ;;  %v1103_v55 = vld [vmem:[#allocation9 + $0x94] ss:$8 sps:$4 sm:$0xff]   ;;  %v1105_v56 = vld [vmem:[#allocation9 + $0x90] ss:$8 sps:$4 sm:$0xff]  }
  0xce   :  { %531 = vmatprep.subr.bf16.mxu1 %v1082_v27  ;;  %v1106_v57 = vld [vmem:[#allocation9 + $0xa4] ss:$8 sps:$4 sm:$0xff]   ;;  %v1108_v58 = vld [vmem:[#allocation9 + $0xa0] ss:$8 sps:$4 sm:$0xff]   ;;  %v1109_v59 = vld [vmem:[#allocation9 + $0xb4] ss:$8 sps:$4 sm:$0xff]  }
  0xcf   :  { %v1111_v60 = vld [vmem:[#allocation9 + $0xb0] ss:$8 sps:$4 sm:$0xff]   ;;  %v1112_v61 = vld [vmem:[#allocation9 + $0xc4] ss:$8 sps:$4 sm:$0xff]   ;;  %v1114_v62 = vld [vmem:[#allocation9 + $0xc0] ss:$8 sps:$4 sm:$0xff]  }
  0xd0   :  { %v1115_v63 = vld [vmem:[#allocation9 + $0xd4] ss:$8 sps:$4 sm:$0xff]   ;;  %v1117_v0 = vld [vmem:[#allocation9 + $0xd0] ss:$8 sps:$4 sm:$0xff]   ;;  %v1118_v1 = vld [vmem:[#allocation9 + $0xe4] ss:$8 sps:$4 sm:$0xff]  }
  0xd1   :  { %532 = vmatpush1.bf16.msra.mxu1 %v1084_v28  ;;  %v1120_v2 = vld [vmem:[#allocation9 + $0xe0] ss:$8 sps:$4 sm:$0xff]   ;;  %v1121_v3 = vld [vmem:[#allocation9 + $0xf4] ss:$8 sps:$4 sm:$0xff]   ;;  %v1123_v4 = vld [vmem:[#allocation9 + $0xf0] ss:$8 sps:$4 sm:$0xff]  }
  0xd2   :  { %533 = vmatprep.subr.bf16.mxu1 %v1085_v29 }
  0xd5   :  { %534 = vmatpush1.bf16.msra.mxu1 %v1087_v30 }
  0xd6   :  { %535 = vmatprep.subr.bf16.mxu1 %v1088_v31 }
  0xd9   :  { %536 = vmatpush1.bf16.msra.mxu1 %v1090_v32 }
  0xda   :  { %537 = vmatprep.subr.bf16.mxu1 %v1091_v33 }
  0xdd   :  { %538 = vmatpush1.bf16.msra.mxu1 %v1093_v34 }
  0xde   :  { %539 = vmatprep.subr.bf16.mxu1 %v1094_v35 }
  0xe1   :  { %540 = vmatpush1.bf16.msra.mxu1 %v1096_v36 }
  0xe2   :  { %541 = vmatprep.subr.bf16.mxu1 %v1097_v37 }
  0xe5   :  { %542 = vmatpush1.bf16.msra.mxu1 %v1099_v38 }
  0xe6   :  { %543 = vmatprep.subr.bf16.mxu1 %v1100_v39  ;;  %v355_v39 = vld [vmem:[#allocation10] sm:$0x3] }
  0xe9   :  { %544 = vmatpush1.bf16.msra.mxu1 %v1102_v40  ;;  %v360_v40 = vrot.slane %v355_v39, %v1663_v8 }
  0xea   :  { %545 = vmatprep.subr.bf16.mxu1 %v1103_v55 }
  0xed   :  { %546 = vmatpush1.bf16.msra.mxu1 %v1105_v56 }
  0xee   :  { %547 = vmatprep.subr.bf16.mxu1 %v1106_v57 }
  0xf1   :  { %548 = vmatpush1.bf16.msra.mxu1 %v1108_v58 }
  0xf2   :  { %549 = vmatprep.subr.bf16.mxu1 %v1109_v59 }
  0xf5   :  { %550 = vmatpush1.bf16.msra.mxu1 %v1111_v60 }
  0xf6   :  { %551 = vmatprep.subr.bf16.mxu1 %v1112_v61 }
  0xf9   :  { %552 = vmatpush1.bf16.msra.mxu1 %v1114_v62 }
  0xfa   :  { %553 = vmatprep.subr.bf16.mxu1 %v1115_v63 }
  0xfd   :  { %554 = vmatpush1.bf16.msra.mxu1 %v1117_v0 }
  0xfe   :  { %555 = vmatprep.subr.bf16.mxu1 %v1118_v1 }
 0x101   :  { %556 = vmatpush1.bf16.msra.mxu1 %v1120_v2 }
 0x102   :  { %557 = vmatprep.subr.bf16.mxu1 %v1121_v3 }
 0x105   :  { %558 = vmatpush1.bf16.msra.mxu1 %v1123_v4  ;;  %v1126_v4 = vld [vmem:[#allocation15 + $0x48] sm:$0xff]  }
 0x19c   :  { %v243_v13 = vpop.f32.mrb[0].mxu0 }
 0x19d   :  { %v244_v14 = vadd.f32 %v243_v13, %v188_v11  ;;  %v245_v15 = vpop.f32.mrb[1].mxu0  ;;  %v252_v13 = vld [vmem:[#allocation6] sm:$0x3] }
 0x19e   :  { %v246_v16 = vadd.f32 %v245_v15, %v192_v12  ;;  %v247_v17 = vpop.f32.mrb[2].mxu0  ;;  %v295_v15 = vrot.slane %v252_v13, %v1665_v10 }
 0x19f   :  { %v249_v18 = vpop.f32.mrb[3].mxu0  ;;  %v248_v19 = vadd.f32 %v247_v17, %v188_v11  ;;  %v253_v17 = vld [vmem:[#allocation7] sm:$0x3] }
 0x1a0   :  { %v250_v20 = vadd.f32 %v249_v18, %v192_v12  ;;  %v254_v21 = vadd.f32 %v246_v16, %v244_v14 }
 0x1a2   :  { %255 = vadd.xlane.f32.xlu0 %v254_v21  ;;  %v257_v22 = vadd.f32 %v250_v20, %v248_v19  ;;  %v306_v21 = vrot.slane %v253_v17, %v1663_v8 }
 0x1a6   :  { %258 = vadd.xlane.f32.xlu0 %v257_v22  ;;  %v310_v22 = vrot.slane %v253_v17, %v1665_v10  ;;  %v1137_v17 = vld [vmem:[#allocation15 + $0x30] sm:$0xff]  }
 0x22f   :  { %v256_v41 = vpop.xlane.xlu0 %255 }
 0x230   :  { %v261_v42 = vmul.f32 0.00390625, %v256_v41  ;;  %v364_v41 = vrot.slane %v355_v39, %v1665_v10 }
 0x232   :  { %v263_v43 = vsub.f32 %v244_v14, %v261_v42  ;;  %v264_v44 = vsub.f32 %v246_v16, %v261_v42  ;;  %v291_v14 = vrot.slane %v252_v13, %v1663_v8  ;;  %v1133_v13 = vld [vmem:[#allocation15 + $0x20] sm:$0xff]  }
 0x233   :  { %v259_v45 = vpop.xlane.xlu0 %258 }
 0x234   :  { %v262_v46 = vmul.f32 0.00390625, %v259_v45  ;;  %v267_v47 = vmul.f32 %v263_v43, %v263_v43  ;;  %v268_v48 = vmul.f32 %v264_v44, %v264_v44 }
 0x236   :  { %v265_v49 = vsub.f32 %v248_v19, %v262_v46  ;;  %v266_v50 = vsub.f32 %v250_v20, %v262_v46  ;;  %v271_v51 = vadd.f32 %v268_v48, %v267_v47 }
 0x238   :  { %272 = vadd.xlane.f32.xlu1 %v271_v51  ;;  %v269_v52 = vmul.f32 %v265_v49, %v265_v49  ;;  %v270_v53 = vmul.f32 %v266_v50, %v266_v50 }
 0x23a   :  { %v274_v54 = vadd.f32 %v270_v53, %v269_v52  ;;  %v1124_v52 = vld [vmem:[#allocation15 + $0x40] sm:$0xff]  }
 0x23b   :  { %v1125_v53 = vld [vmem:[#allocation15] sm:$0xff]   ;;  %1004 = vmatprep.subr.bf16.mxu0 %v1124_v52 }
 0x23c   :  { %275 = vadd.xlane.f32.xlu1 %v274_v54  ;;  %1005 = vmatpush3.bf16.msra.mxu0 %v1125_v53  ;;  %v1142_v53 = vld [vmem:[%s1720_s11 + $0x10] sm:$0xff]  }
 0x23d   :  { %1006 = vmatprep.subr.bf16.mxu0 %v1126_v4 }
 0x2c5   :  { %v273_v5 = vpop.xlane.xlu1 %272 }
 0x2c6   :  { %v277_v6 = vmul.f32 0.00390625, %v273_v5  ;;  %v1127_v5 = vld [vmem:[#allocation15 + $0x8] sm:$0xff]  }
 0x2c7   :  { %1007 = vmatpush3.bf16.msra.mxu0 %v1127_v5 }
 0x2c8   :  { %v279_v7 = vadd.f32 1e-05, %v277_v6  ;;  %v1128_v6 = vld [vmem:[#allocation15 + $0x50] sm:$0xff]  }
 0x2c9   :  { %v276_v9 = vpop.xlane.xlu1 %275  ;;  %1008 = vmatprep.subr.bf16.mxu0 %v1128_v6 }
 0x2ca   :  { %1148 = vrsqrt.f32 %v279_v7  ;;  %v278_v11 = vmul.f32 0.00390625, %v276_v9  ;;  %v1129_v7 = vld [vmem:[#allocation15 + $0x10] sm:$0xff]   ;;  %v1130_v9 = vld [vmem:[#allocation15 + $0x58] sm:$0xff]  }
 0x2cb   :  { %1009 = vmatpush3.bf16.msra.mxu0 %v1129_v7  ;;  %v995_v7 = vld [vmem:[#allocation18] ss:$0 sm:$0xff] }
 0x2cc   :  { %v280_v12 = vadd.f32 1e-05, %v278_v11  ;;  %v1131_v11 = vld [vmem:[#allocation15 + $0x18] sm:$0xff]   ;;  %1010 = vmatprep.subr.bf16.mxu0 %v1130_v9 }
 0x2ce   :  { %1150 = vrsqrt.f32 %v280_v12  ;;  %v1132_v12 = vld [vmem:[#allocation15 + $0x60] sm:$0xff]  }
 0x2cf   :  { %1011 = vmatpush3.bf16.msra.mxu0 %v1131_v11 }
 0x2d0   :  { %1012 = vmatprep.subr.bf16.mxu0 %v1132_v12 }
 0x2d3   :  { %1013 = vmatpush3.bf16.msra.mxu0 %v1133_v13 }
 0x2d4   :  { %v1149_v16 = vpop.eup %1148 }
 0x2d5   :  { %v284_v18 = vmul.f32 %v1149_v16, %v264_v44  ;;  %v283_v19 = vmul.f32 %v1149_v16, %v263_v43  ;;  %v1136_v16 = vld [vmem:[#allocation15 + $0x70] sm:$0xff]  }
 0x2d7   :  { %v299_v20 = vmul.f32 %v295_v15, %v284_v18  ;;  %v298_v23 = vmul.f32 %v291_v14, %v283_v19  ;;  %v1138_v18 = vld [vmem:[#allocation15 + $0x78] sm:$0xff]  }
 0x2d8   :  { %v1151_v24 = vpop.eup %1150  ;;  %v1139_v19 = vld [vmem:[#allocation15 + $0x38] sm:$0xff]  }
 0x2d9   :  { %v286_v25 = vmul.f32 %v1151_v24, %v266_v50  ;;  %v285_v26 = vmul.f32 %v1151_v24, %v265_v49  ;;  %v314_v28 = vadd.f32 %v310_v22, %v299_v20  ;;  %v313_v30 = vadd.f32 %v306_v21, %v298_v23 }
 0x2da   :  { %v1426_v20 = vmov 0.0  }
 0x2db   :  { %v301_v27 = vmul.f32 %v295_v15, %v286_v25  ;;  %v300_v29 = vmul.f32 %v291_v14, %v285_v26  ;;  %v318_v33 = vmax.f32 %v314_v28, 0.0  ;;  %v317_v35 = vmax.f32 %v313_v30, 0.0  ;;  %v1134_v14 = vld [vmem:[#allocation15 + $0x68] sm:$0xff]   ;;  %v571_v28 = vld [vmem:[#allocation13] sm:$0x3] }
 0x2dc   :  { %v1135_v15 = vld [vmem:[#allocation15 + $0x28] sm:$0xff]   ;;  %1014 = vmatprep.subr.bf16.mxu0 %v1134_v14 }
 0x2dd   :  { %v316_v31 = vadd.f32 %v310_v22, %v301_v27  ;;  %v315_v32 = vadd.f32 %v306_v21, %v300_v29  ;;  %1015 = vmatpush3.bf16.msra.mxu0 %v1135_v15  ;;  %v570_v27 = vld [vmem:[#allocation12] sm:$0x3] }
 0x2de   :  { %1016 = vmatprep.subr.bf16.mxu0 %v1136_v16  ;;  %v608_v29 = vrot.slane %v570_v27, %v1663_v8  ;;  %v612_v30 = vrot.slane %v570_v27, %v1665_v10 }
 0x2df   :  { %v320_v34 = vmax.f32 %v316_v31, 0.0  ;;  %v319_v36 = vmax.f32 %v315_v32, 0.0 }
 0x2e1   :  { %v322_v37 = vpack.c.bf16 %v320_v34, %v318_v33  ;;  %v321_v38 = vpack.c.bf16 %v319_v36, %v317_v35  ;;  %1017 = vmatpush3.bf16.msra.mxu0 %v1137_v17  ;;  %v623_v34 = vrot.slane %v571_v28, %v1663_v8  ;;  %v627_v35 = vrot.slane %v571_v28, %v1665_v10  ;;  %v1140_v8 = vld [vmem:[%s1720_s11] sm:$0xff]   ;;  %v1141_v10 = vld [vmem:[%s1720_s11 + $0x8] sm:$0xff]  }
 0x2e2   :  { %1018 = vmatprep.subr.bf16.mxu0 %v1138_v18 }
 0x2e3   :  { %559 = vmatprep.mubr.bf16.mxu1 %v322_v37 }
 0x2e4   :  { %560 = vmatmul.mubr.bf16.vlgmr.msra.gmra.mrb[0].mxu1 %v321_v38 }
 0x2e5   :  { %1019 = vmatpush3.bf16.msra.mxu0 %v1139_v19 }
 0x2e6   :  { %1035 = vmatprep.subr.bf16.mxu0 %v1426_v20 }
 0x3b7   :  { %v561_v42 = vpop.f32.mrb[0].mxu1 }
 0x3b8   :  { %v562_v43 = vadd.f32 %v561_v42, %v360_v40  ;;  %v563_v44 = vpop.f32.mrb[1].mxu1 }
 0x3b9   :  { %v564_v45 = vadd.f32 %v563_v44, %v364_v41  ;;  %v565_v46 = vpop.f32.mrb[2].mxu1 }
 0x3ba   :  { %v566_v47 = vadd.f32 %v565_v46, %v360_v40  ;;  %v567_v48 = vpop.f32.mrb[3].mxu1 }
 0x3bb   :  { %v568_v49 = vadd.f32 %v567_v48, %v364_v41  ;;  %v572_v50 = vadd.f32 %v564_v45, %v562_v43 }
 0x3bd   :  { %573 = vadd.xlane.f32.xlu0 %v572_v50  ;;  %v575_v51 = vadd.f32 %v568_v49, %v566_v47 }
 0x3bf   :  { %576 = vadd.xlane.f32.xlu1 %v575_v51 }
 0x44a   :  { %v574_v54 = vpop.xlane.xlu0 %573 }
 0x44b   :  { %v578_v55 = vmul.f32 0.00390625, %v574_v54  ;;  %v1143_v54 = vld [vmem:[%s1720_s11 + $0x18] sm:$0xff]  }
 0x44c   :  { %v577_v56 = vpop.xlane.xlu1 %576 }
 0x44d   :  { %v580_v57 = vsub.f32 %v562_v43, %v578_v55  ;;  %v581_v58 = vsub.f32 %v564_v45, %v578_v55  ;;  %v579_v59 = vmul.f32 0.00390625, %v577_v56  ;;  %v1144_v55 = vld [vmem:[%s1720_s11 + $0x20] sm:$0xff]   ;;  %v1145_v56 = vld [vmem:[%s1720_s11 + $0x28] sm:$0xff]  }
 0x44f   :  { %v582_v60 = vsub.f32 %v566_v47, %v579_v59  ;;  %v583_v61 = vsub.f32 %v568_v49, %v579_v59  ;;  %v584_v62 = vmul.f32 %v580_v57, %v580_v57  ;;  %v585_v63 = vmul.f32 %v581_v58, %v581_v58 }
 0x451   :  { %v588_v0 = vadd.f32 %v585_v63, %v584_v62  ;;  %v586_v1 = vmul.f32 %v582_v60, %v582_v60  ;;  %v587_v2 = vmul.f32 %v583_v61, %v583_v61 }
 0x453   :  { %589 = vadd.xlane.f32.xlu0 %v588_v0  ;;  %v591_v3 = vadd.f32 %v587_v2, %v586_v1 }
 0x455   :  { %592 = vadd.xlane.f32.xlu1 %v591_v3 }
 0x4e0   :  { %v590_v21 = vpop.xlane.xlu0 %589 }
 0x4e1   :  { %v594_v22 = vmul.f32 0.00390625, %v590_v21 }
 0x4e2   :  { %v593_v23 = vpop.xlane.xlu1 %592 }
 0x4e3   :  { %v596_v24 = vadd.f32 1e-05, %v594_v22  ;;  %v595_v25 = vmul.f32 0.00390625, %v593_v23 }
 0x4e5   :  { %1152 = vrsqrt.f32 %v596_v24  ;;  %v597_v26 = vadd.f32 1e-05, %v595_v25 }
 0x4e7   :  { %1154 = vrsqrt.f32 %v597_v26 }
 0x4ef   :  { %v1153_v31 = vpop.eup %1152 }
 0x4f0   :  { %v600_v32 = vmul.f32 %v1153_v31, %v580_v57  ;;  %v601_v33 = vmul.f32 %v1153_v31, %v581_v58  ;;  %v1146_v57 = vld [vmem:[%s1720_s11 + $0x30] sm:$0xff]   ;;  %v1147_v58 = vld [vmem:[%s1720_s11 + $0x38] sm:$0xff]  }
 0x4f1   :  { %v1155_v36 = vpop.eup %1154 }
 0x4f2   :  { %v602_v37 = vmul.f32 %v1155_v36, %v582_v60  ;;  %v603_v38 = vmul.f32 %v1155_v36, %v583_v61  ;;  %v616_v39 = vmul.f32 %v612_v30, %v601_v33  ;;  %v615_v40 = vmul.f32 %v608_v29, %v600_v32  ;;  %v978_v60 = vld [vmem:[#allocation16] ss:$0 sm:$0xff] }
 0x4f4   :  { %v618_v41 = vmul.f32 %v612_v30, %v603_v38  ;;  %v631_v42 = vadd.f32 %v627_v35, %v616_v39  ;;  %v617_v43 = vmul.f32 %v608_v29, %v602_v37  ;;  %v630_v44 = vadd.f32 %v623_v34, %v615_v40 }
 0x4f6   :  { %v633_v45 = vadd.f32 %v627_v35, %v618_v41  ;;  %v632_v46 = vadd.f32 %v623_v34, %v617_v43  ;;  %v635_v47 = vmax.f32 %v631_v42, 0.0  ;;  %v634_v49 = vmax.f32 %v630_v44, 0.0 }
 0x4f8   :  { %v637_v48 = vmax.f32 %v633_v45, 0.0  ;;  %v636_v50 = vmax.f32 %v632_v46, 0.0 }
 0x4fa   :  { %v639_v51 = vpack.c.bf16 %v637_v48, %v635_v47  ;;  %v638_v52 = vpack.c.bf16 %v636_v50, %v634_v49 }
 0x4fc   :  { %807 = vmatprep.mubr.bf16.mxu0 %v639_v51 }
 0x4fd   :  { %808 = vmatmul.mubr.bf16.vlgmr.msra.gmra.mrb[4].mxu0 %v638_v52 }
 0x4fe   :  { %1036 = vmatpush3.bf16.msra.mxu0 %v1140_v8  ;;  %1051 = vmatprep.mubr.msk.bf16.mxu0 %vm1427_vm1, %v1426_v20 }
 0x4ff   :  { %1037 = vmatprep.subr.bf16.mxu0 %v1426_v20 }
 0x502   :  { %1038 = vmatpush3.bf16.msra.mxu0 %v1141_v10 }
 0x503   :  { %1039 = vmatprep.subr.bf16.mxu0 %v1426_v20 }
 0x506   :  { %1040 = vmatpush3.bf16.msra.mxu0 %v1142_v53 }
 0x507   :  { %1041 = vmatprep.subr.bf16.mxu0 %v1426_v20 }
 0x50a   :  { %1042 = vmatpush3.bf16.msra.mxu0 %v1143_v54 }
 0x50b   :  { %1043 = vmatprep.subr.bf16.mxu0 %v1426_v20 }
 0x50e   :  { %1044 = vmatpush3.bf16.msra.mxu0 %v1144_v55 }
 0x50f   :  { %1045 = vmatprep.subr.bf16.mxu0 %v1426_v20 }
 0x512   :  { %1046 = vmatpush3.bf16.msra.mxu0 %v1145_v56 }
 0x513   :  { %1047 = vmatprep.subr.bf16.mxu0 %v1426_v20 }
 0x516   :  { %1048 = vmatpush3.bf16.msra.mxu0 %v1146_v57 }
 0x517   :  { %1049 = vmatprep.subr.bf16.mxu0 %v1426_v20 }
 0x51a   :  { %1050 = vmatpush3.bf16.msra.mxu0 %v1147_v58 }
 0x5d0   :  { %v1020_v59 = vpop.f32.mrb[4].mxu0 }
 0x5d1   :  { %v1021_v61 = vpop.f32.mrb[5].mxu0 }
 0x5d2   :  { %v1022_v62 = vadd.f32 %v1021_v61, %v1020_v59  ;;  %v1023_v63 = vpop.f32.mrb[6].mxu0 }
 0x5d3   :  { %v1024_v0 = vpop.f32.mrb[7].mxu0 }
 0x5d4   :  { %v810_v1 = vadd.f32 %v1022_v62, %v978_v60  ;;  %v1025_v2 = vadd.f32 %v1024_v0, %v1023_v63 }
 0x5d6   :  { %v813_v3 = vadd.f32 %v1025_v2, %v978_v60  ;;  %v816_v4 = vmax.f32 %v810_v1, 0.0 }
 0x5d8   :  { %v817_v5 = vmax.f32 %v813_v3, 0.0 }
 0x5da   :  { %v818_v6 = vpack.c.bf16 %v817_v5, %v816_v4 }
 0x5dc   :  { %1052 = vmatmul.mubr.bf16.vlgmr.msra.gmra.mrb[8].mxu0 %v818_v6 }
 0x6af   :  { %v924_v9 = vpop.f32.mrb[8].mxu0 }
 0x6b0   :  { %v925_v11 = vadd.f32 %v995_v7, %v924_v9  ;;  %v1053_v12 = vpop.f32.mrb[9].mxu0 }
 0x6b1   :  { %v927_v13 = vpop.f32.mrb[10].mxu0 }
 0x6b2   :  { %931 = vst [vmem:[%s1722_s13] sm:$0xff] %v925_v11  ;;  %v928_v14 = vadd.f32 %v995_v7, %v927_v13  ;;  %v1054_v15 = vpop.f32.mrb[11].mxu0 }
 0x6b4   :  { %932 = vst [vmem:[%s1722_s13 + $0x8] sm:$0xff] %v928_v14 }
 0x6b5   :  { %937 = vsyncpa [#allocation3], 1 }
 0x6b6   :  { %938 = vsyncpa [#allocation5], 1 }
 0x6b7   :  { %939 = vsyncpa [#allocation8], 1 }
 0x6b8   :  { %940 = vsyncpa [#allocation11], 1 }
 0x6b9   :  { %941 = vsyncpa [#allocation14], 1 }
 0x6ba   :  { %942 = vsyncpa [#allocation17], 1 }

</bundles_post_ra>
